<compile_context>
chip_gen: v7x
topology: tpu7x:2x2x1
jax: 0.10.0
libtpu: 0.0.40
codegen_flags: <defaults>
</compile_context>

<pallas_src>
import functools

import jax
import jax.numpy as jnp
from jax.experimental import pallas as pl
from jax.experimental.pallas import tpu as pltpu


def _classifier_kernel(x_ref, w_ref, inv_ref, o_ref, acc_ref, *, precision):
    # x_ref:   [tm, tk]  activation tile (compute dtype)
    # w_ref:   [tn, tk]  raw (un-normalized) weight tile (compute dtype)
    # inv_ref: [1,  tn]  f32 per-class 1/max(||W_c||_2, 1e-12), precomputed
    # o_ref:   [tm, tn]  output tile (x.dtype)
    # acc_ref: [tm, tn]  f32 accumulator, persists across the E (k) axis
    k = pl.program_id(2)

    @pl.when(k == 0)
    def _init():
        acc_ref[...] = jnp.zeros_like(acc_ref)

    # Main MXU work: contract over E without materializing w.T.
    acc_ref[...] += jax.lax.dot_general(
        x_ref[...],
        w_ref[...],
        dimension_numbers=(((1,), (1,)), ((), ())),
        preferred_element_type=jnp.float32,
        precision=precision,
    )

    @pl.when(k == pl.num_programs(2) - 1)
    def _finalize():
        # F.normalize(W, dim=1) folded into a per-class output-column scale.
        o_ref[...] = (acc_ref[...] * inv_ref[...]).astype(o_ref.dtype)


def _round_up(a, b):
    return (a + b - 1) // b * b


def _largest_aligned_divisor(total, base, cap):
    """Largest multiple of `base` that divides `total` and is <= cap."""
    best = base
    d = base
    while d <= cap:
        if total % d == 0:
            best = d
        d += base
    return best


def classifier_forward(x, weight, *, compute_dtype=jnp.bfloat16,
                       tm=None, tn=None, tk=None):
    """out[b, c] = sum_e x[b, e] * (W[c, e] / max(||W[c, :]||_2, 1e-12))."""
    B, E = x.shape
    C, E2 = weight.shape
    assert E == E2, (x.shape, weight.shape)

    out_dtype = x.dtype

    # ---- Per-class inverse norms, computed ONCE in f32 outside the hot loop.
    w_f32 = weight.astype(jnp.float32)
    nsq = jnp.sum(w_f32 * w_f32, axis=1)                      # [C]
    # rsqrt(max(||w||^2, eps^2)) == 1/max(||w||, eps), eps = 1e-12 (torch).
    inv_norm = jax.lax.rsqrt(jnp.maximum(nsq, 1e-24)).astype(jnp.float32)

    # ---- Cast streamed operands to the compute dtype (bf16 by default:
    #      half the HBM weight traffic, full-rate MXU on v6e/v7x).
    xc = x.astype(compute_dtype)
    wc = weight.astype(compute_dtype)
    cbytes = jnp.dtype(compute_dtype).itemsize
    obytes = jnp.dtype(out_dtype).itemsize

    # ---- Tile selection: sublane-aligned M, lane-dense N (x128), fat K.
    Cp = _round_up(C, 128)
    Ep = _round_up(E, 128)

    if tm is None:
        tm = min(_round_up(B, 8), 1024)
    m_tiles = pl.cdiv(B, tm)

    if tn is None:
        cap_n = 512
        # v7x megacore: with a single M tile, keep >= 2 tiles on the C axis so
        # both TensorCores get work (no effect on single-TC v5e/v6e).
        if m_tiles == 1 and Cp >= 256:
            cap_n = min(cap_n, max(128, (Cp // 2) // 128 * 128))
        tn = _largest_aligned_divisor(Cp, 128, cap_n)
    if tk is None:
        tk = _largest_aligned_divisor(Ep, 128, min(Ep, 2048))

    # ---- Double-buffered VMEM footprint check (inputs+output) + f32 acc.
    def vmem_bytes(_tm, _tn, _tk):
        return (2 * (_tm * _tk * cbytes + _tn * _tk * cbytes + _tn * 4)
                + 2 * _tm * _tn * obytes
                + _tm * _tn * 4)

    VMEM_BUDGET = 24 << 20  # safe on v5e/v6e (128 MiB) and v7x (64 MiB phys)
    while vmem_bytes(tm, tn, tk) > VMEM_BUDGET:
        if tk >= 256:
            tk //= 2       # halving keeps 128-alignment and divisibility
        elif tn >= 256:
            tn //= 2
        elif tm > 8:
            tm = max(8, tm // 2)
        else:
            break

    Mp = _round_up(B, tm)
    Cp = _round_up(C, tn)
    Ep = _round_up(E, tk)

    # Padding.  With divisor-based tn/tk, W is only padded (extra HBM copy)
    # when C or E is not already a multiple of 128; x (small) pads cheaply.
    if (Mp, Ep) != (B, E):
        xc = jnp.pad(xc, ((0, Mp - B), (0, Ep - E)))
    if (Cp, Ep) != (C, E):
        wc = jnp.pad(wc, ((0, Cp - C), (0, Ep - E)))
    inv2d = inv_norm.reshape(1, C)
    if Cp != C:
        inv2d = jnp.pad(inv2d, ((0, 0), (0, Cp - C)))
    # Zero padding is exact: padded E contributes 0; padded class rows give
    # acc == 0 (any finite inv-norm scale keeps them 0) and are sliced off.

    grid = (Mp // tm, Cp // tn, Ep // tk)  # reduction (E) axis last

    precision = (jax.lax.Precision.HIGHEST
                 if jnp.dtype(compute_dtype) == jnp.float32 else None)
    kernel = functools.partial(_classifier_kernel, precision=precision)

    vmem_limit = min(int(vmem_bytes(tm, tn, tk) * 1.25) + (4 << 20), 64 << 20)

    out = pl.pallas_call(
        kernel,
        out_shape=jax.ShapeDtypeStruct((Mp, Cp), out_dtype),
        grid_spec=pltpu.PrefetchScalarGridSpec(
            num_scalar_prefetch=0,
            grid=grid,
            in_specs=[
                pl.BlockSpec((tm, tk), lambda i, j, k: (i, k)),   # x
                pl.BlockSpec((tn, tk), lambda i, j, k: (j, k)),   # W (raw)
                pl.BlockSpec((1, tn), lambda i, j, k: (0, j)),    # 1/||W_c||
            ],
            out_specs=pl.BlockSpec((tm, tn), lambda i, j, k: (i, j)),
            scratch_shapes=[pltpu.VMEM((tm, tn), jnp.float32)],   # f32 acc
        ),
        compiler_params=pltpu.CompilerParams(
            dimension_semantics=("parallel", "parallel", "arbitrary"),
            vmem_limit_bytes=vmem_limit,
        ),
    )(xc, wc, inv2d)

    return out[:B, :C]


def xavier_uniform(key, shape, dtype=jnp.float32):
    # nn.init.xavier_uniform_ for a [fan_out, fan_in] Linear weight
    fan_out, fan_in = shape
    limit = jnp.sqrt(6.0 / (fan_in + fan_out))
    return jax.random.uniform(key, shape, dtype=dtype, minval=-limit, maxval=limit)


if __name__ == "__main__":
    key = jax.random.PRNGKey(0)
    k_x, k_w = jax.random.split(key)

    B = 8              # batch (small smoke-test size)
    n_embedding = 128
    num_classes = 128

    x = jax.random.normal(k_x, (B, n_embedding), dtype=jnp.float32)
    weight = xavier_uniform(k_w, (num_classes, n_embedding), dtype=jnp.float32)

    # Reference (torch F.normalize + Linear without bias), full f32 precision.
    w_n = weight / jnp.maximum(
        jnp.sqrt(jnp.sum(weight * weight, axis=-1, keepdims=True)), 1e-12)
    ref = jnp.dot(x, w_n.T, precision=jax.lax.Precision.HIGHEST)

    # Default fast path: bf16 streaming, f32 accumulation.
    out_bf16 = classifier_forward(x, weight)
    jax.block_until_ready(out_bf16)
    assert out_bf16.shape == (B, num_classes)
    assert jnp.allclose(out_bf16, ref, atol=2e-2, rtol=2e-2), (
        float(jnp.max(jnp.abs(out_bf16 - ref))))

    # Exact-precision path: f32 inputs with precision=HIGHEST on the MXU.
    out_f32 = classifier_forward(x, weight, compute_dtype=jnp.float32)
    jax.block_until_ready(out_f32)
    assert jnp.allclose(out_f32, ref, atol=1e-5, rtol=1e-5), (
        float(jnp.max(jnp.abs(out_f32 - ref))))

    print("KERNEL_OK")
</pallas_src>

<mosaic_0001>
module attributes {stable_mosaic.version = 11 : i64} {
  func.func @_classifier_kernel(%arg0: i32, %arg1: i32, %arg2: i32, %arg3: memref<8x128xbf16, #tpu.memory_space<vmem>>, %arg4: memref<128x128xbf16, #tpu.memory_space<vmem>>, %arg5: memref<1x128xf32, #tpu.memory_space<vmem>>, %arg6: memref<8x128xf32, #tpu.memory_space<vmem>>, %arg7: memref<8x128xf32, #tpu.memory_space<vmem>>) attributes {dimension_semantics = [#tpu.dimension_semantics<parallel>, #tpu.dimension_semantics<parallel>, #tpu.dimension_semantics<arbitrary>], iteration_bounds = array<i64: 1, 1, 1>, scalar_prefetch = 0 : i64, scratch_operands = 1 : i64, tpu.core_type = #tpu.core_type<tc>, window_params = [{transform_indices = @transform_0, window_bounds = array<i64: 8, 128>}, {transform_indices = @transform_1, window_bounds = array<i64: 128, 128>}, {transform_indices = @transform_2, window_bounds = array<i64: 1, 128>}, {transform_indices = @transform_3, window_bounds = array<i64: 8, 128>}]} {
    %c0_i32 = arith.constant 0 : i32
    %0 = arith.cmpi eq, %arg2, %c0_i32 : i32
    %1 = arith.extui %0 : i1 to i32
    %c0_i32_0 = arith.constant 0 : i32
    %2 = arith.cmpi ne, %1, %c0_i32_0 : i32
    scf.if %2 {
      %cst_10 = arith.constant 0.000000e+00 : f32
      %12 = vector.broadcast %cst_10 : f32 to vector<8x128xf32>
      %c0_11 = arith.constant 0 : index
      %c0_12 = arith.constant 0 : index
      %13 = vector.load %arg7[%c0_11, %c0_12] : memref<8x128xf32, #tpu.memory_space<vmem>>, vector<8x128xf32>
      tpu.vector_store %arg7[%c0_11, %c0_12], %12 {strides = array<i32>} : memref<8x128xf32, #tpu.memory_space<vmem>>, vector<8x128xf32>,
    } else {
    }
    %c0 = arith.constant 0 : index
    %c0_1 = arith.constant 0 : index
    %3 = vector.load %arg7[%c0, %c0_1] : memref<8x128xf32, #tpu.memory_space<vmem>>, vector<8x128xf32>
    %c0_2 = arith.constant 0 : index
    %c0_3 = arith.constant 0 : index
    %4 = vector.load %arg3[%c0_2, %c0_3] : memref<8x128xbf16, #tpu.memory_space<vmem>>, vector<8x128xbf16>
    %c0_4 = arith.constant 0 : index
    %c0_5 = arith.constant 0 : index
    %5 = vector.load %arg4[%c0_4, %c0_5] : memref<128x128xbf16, #tpu.memory_space<vmem>>, vector<128x128xbf16>
    %cst = arith.constant dense<0.000000e+00> : vector<8x128xf32>
    %6 = tpu.matmul %4, %5, %cst {dimension_numbers = #tpu.dot_dimension_numbers<[1], [1], [0], [0], [0, 0, 1, 0], [], []>} : vector<8x128xbf16>, vector<128x128xbf16>, vector<8x128xf32> -> vector<8x128xf32>
    %7 = arith.addf %3, %6 : vector<8x128xf32>
    %c0_6 = arith.constant 0 : index
    %c0_7 = arith.constant 0 : index
    %8 = vector.load %arg7[%c0_6, %c0_7] : memref<8x128xf32, #tpu.memory_space<vmem>>, vector<8x128xf32>
    tpu.vector_store %arg7[%c0_6, %c0_7], %7 {strides = array<i32>} : memref<8x128xf32, #tpu.memory_space<vmem>>, vector<8x128xf32>,
    %c0_i32_8 = arith.constant 0 : i32
    %9 = arith.cmpi eq, %arg2, %c0_i32_8 : i32
    %10 = arith.extui %9 : i1 to i32
    %c0_i32_9 = arith.constant 0 : i32
    %11 = arith.cmpi ne, %10, %c0_i32_9 : i32
    scf.if %11 {
      %c0_10 = arith.constant 0 : index
      %c0_11 = arith.constant 0 : index
      %12 = vector.load %arg7[%c0_10, %c0_11] : memref<8x128xf32, #tpu.memory_space<vmem>>, vector<8x128xf32>
      %c0_12 = arith.constant 0 : index
      %c0_13 = arith.constant 0 : index
      %13 = vector.load %arg5[%c0_12, %c0_13] : memref<1x128xf32, #tpu.memory_space<vmem>>, vector<1x128xf32>
      %14 = vector.broadcast %13 : vector<1x128xf32> to vector<8x128xf32>
      %15 = arith.mulf %12, %14 : vector<8x128xf32>
      %c0_14 = arith.constant 0 : index
      %c0_15 = arith.constant 0 : index
      %16 = vector.load %arg6[%c0_14, %c0_15] : memref<8x128xf32, #tpu.memory_space<vmem>>, vector<8x128xf32>
      tpu.vector_store %arg6[%c0_14, %c0_15], %15 {strides = array<i32>} : memref<8x128xf32, #tpu.memory_space<vmem>>, vector<8x128xf32>,
    } else {
    }
    return
  }
  func.func @transform_0(%arg0: i32, %arg1: i32, %arg2: i32) -> (i32, i32) {
    %c0_i32 = arith.constant 0 : i32
    return %arg0, %arg2 : i32, i32
  }
  func.func @transform_1(%arg0: i32, %arg1: i32, %arg2: i32) -> (i32, i32) {
    %c0_i32 = arith.constant 0 : i32
    return %arg1, %arg2 : i32, i32
  }
  func.func @transform_2(%arg0: i32, %arg1: i32, %arg2: i32) -> (i32, i32) {
    %c0_i32 = arith.constant 0 : i32
    %c0_i32_0 = arith.constant 0 : i32
    return %c0_i32, %arg1 : i32, i32
  }
  func.func @transform_3(%arg0: i32, %arg1: i32, %arg2: i32) -> (i32, i32) {
    %c0_i32 = arith.constant 0 : i32
    return %arg0, %arg1 : i32, i32
  }
}

</mosaic_0001>

<bundles_post_ra>
// kernel: tpu_custom_call.1
= control target key start
LH: loop header
LB: loop body
LE: loop exit
PB: predicated region body
PF: predicated region fallthrough
CT: control target
= control target key end

     0   :  { %8 = vsyncpa [#allocation4], 0  ;;  %s382_s0 = inlined_call_operand.hbm [shape: bf16[8,128], index: 0, kind: input, shape index: {}]   ;;  %s383_s1 = inlined_call_operand.hbm [shape: bf16[128,128], index: 1, kind: input, shape index: {}]   ;;  %s384_s2 = inlined_call_operand.vmem [shape: f32[1,128], index: 2, kind: input, shape index: {}]   ;;  %s385_s3 = inlined_call_operand.hbm [shape: f32[8,128], index: 3, kind: output, shape index: {}]  }
   0x1   :  { %9 = vsyncpa [#allocation7], 0 }
   0x2   :  { %10 = vsyncpa [#allocation5], 0  ;;  %s309_s12 = smov [#allocation3]   ;;  %s310_s14 = smov [#allocation6]  }
   0x3   :  { %s17_s13 = sshll.u32 %s309_s12, 4  ;;  %s26_s15 = sshll.u32 %s310_s14, 4  ;;  %s18_s13 = int_to_ptr.vmem [resolvable:$true] %s17_s13  ;;  %s336_s15 = int_to_ptr.vmem [resolvable:$true] %s26_s15 }
   0x4   :  { %s237_s18 = scalar_lea.hbm %s382_s0, 64 }
   0x5   :  { %p238_p0 = scmp.ne.s32.totalorder %s382_s0, %s237_s18  ;;  %p241_p1 = scmp.lt.u32.totalorder %s237_s18, %s382_s0 }
   0x7   :  { %p243_p2 = pnand %p241_p1, %p238_p0 }
   0x9   :  { %246 = shalt.err (!%p243_p2)
}
   0xa   :  { %s247_s23 = scalar_lea.vmem %s18_s13, 64  ;;  %p252_p4 = scmp.lt.s32.totalorder %s18_s13, %s18_s13 }
   0xb   :  { %p248_p3 = scmp.ne.s32.totalorder %s18_s13, %s247_s23  ;;  %p253_p5 = scmp.lt.s32.totalorder %s247_s23, %s247_s23 }
   0xd   :  { %p254_p6 = por %p253_p5, %p252_p4 }
   0xf   :  { %p255_p7 = pnand %p254_p6, %p248_p3 }
  0x11   :  { %258 = shalt.err (!%p255_p7)
}
  0x12   :  { %20 = dma.hbm_to_vmem [thread:$0]  %s382_s0, 64, %s18_s13, [#allocation4]  }
  0x13   :  { %s259_s28 = scalar_lea.hbm %s383_s1, 1024 }
  0x14   :  { %p260_p8 = scmp.ne.s32.totalorder %s383_s1, %s259_s28  ;;  %p263_p9 = scmp.lt.u32.totalorder %s259_s28, %s383_s1 }
  0x16   :  { %p265_p10 = pnand %p263_p9, %p260_p8 }
  0x18   :  { %268 = shalt.err (!%p265_p10)
}
  0x19   :  { %s269_s6 = scalar_lea.vmem %s336_s15, 1024  ;;  %p274_p12 = scmp.lt.s32.totalorder %s336_s15, %s336_s15 }
  0x1a   :  { %p270_p11 = scmp.ne.s32.totalorder %s336_s15, %s269_s6  ;;  %p275_p13 = scmp.lt.s32.totalorder %s269_s6, %s269_s6 }
  0x1c   :  { %p276_p0 = por %p275_p13, %p274_p12 }
  0x1e   :  { %p277_p1 = pnand %p276_p0, %p270_p11 }
  0x20   :  { %280 = shalt.err (!%p277_p1)
}
  0x21   :  { %s311_s0 = smov 64   ;;  %s312_s7 = smov 4  }
  0x22   :  { %32 = dma.hbm_to_vmem [thread:$0]  %s383_s1, 1024, %s336_s15, [#allocation7], %s311_s0, %s311_s0, %s312_s7  }
  0x23   :  { %303 = dma.done.wait [#allocation4], 64  }
  0x24   :  { %304 = vsyncadd [#allocation4], 4294967232 }
  0x25   :  { %305 = dma.done.wait [#allocation7], 1024  }
  0x26   :  { %306 = vsyncadd [#allocation7], 4294966272  ;;  %v313_v0 = vmov 0.0   ;;  %vm314_vm0 = vmmov 0   ;;  %v229_v1 = vld [vmem:[#allocation6] sm:$0xff]   ;;  %v230_v2 = vld [vmem:[#allocation6 + $0x8] sm:$0xff]  }
  0x27   :  { %202 = vmatprep.subr.bf16.mxu0 %v313_v0  ;;  %218 = vmatprep.mubr.msk.bf16.mxu0 %vm314_vm0, %v313_v0  ;;  %v231_v3 = vld [vmem:[#allocation6 + $0x10] sm:$0xff]   ;;  %v232_v4 = vld [vmem:[#allocation6 + $0x18] sm:$0xff]   ;;  %v233_v5 = vld [vmem:[#allocation6 + $0x20] sm:$0xff]   ;;  %s315_s11 = smov [#allocation8]  }
  0x28   :  { %203 = vmatpush3.bf16.xpose.msra.mxu0 %v229_v1  ;;  %v234_v6 = vld [vmem:[#allocation6 + $0x28] sm:$0xff]   ;;  %v235_v7 = vld [vmem:[#allocation6 + $0x30] sm:$0xff]   ;;  %v236_v8 = vld [vmem:[#allocation6 + $0x38] sm:$0xff]   ;;  %s174_s12 = sshll.u32 %s315_s11, 4  ;;  %s175_s12 = int_to_ptr.vmem [resolvable:$true] %s174_s12 }
  0x29   :  { %204 = vmatprep.subr.bf16.mxu0 %v313_v0  ;;  %v48_v9 = vld [vmem:[#allocation3] sm:$0xf]  ;;  %s281_s13 = scalar_lea.vmem %s175_s12, 128  ;;  %p286_p3 = scmp.lt.s32.totalorder %s175_s12, %s175_s12 }
  0x2a   :  { %v192_v10 = vld [vmem:[%s384_s2] ss:$0 sm:$0xff]  ;;  %p282_p2 = scmp.ne.s32.totalorder %s175_s12, %s281_s13  ;;  %p287_p4 = scmp.lt.s32.totalorder %s281_s13, %s281_s13 }
  0x2c   :  { %p288_p5 = por %p287_p4, %p286_p3 }
  0x2e   :  { %p289_p6 = pnand %p288_p5, %p282_p2 }
  0x30   :  { %205 = vmatpush3.bf16.xpose.msra.mxu0 %v230_v2 }
  0x31   :  { %206 = vmatprep.subr.bf16.mxu0 %v313_v0 }
  0x38   :  { %207 = vmatpush3.bf16.xpose.msra.mxu0 %v231_v3 }
  0x39   :  { %208 = vmatprep.subr.bf16.mxu0 %v313_v0 }
  0x40   :  { %209 = vmatpush3.bf16.xpose.msra.mxu0 %v232_v4 }
  0x41   :  { %210 = vmatprep.subr.bf16.mxu0 %v313_v0 }
  0x48   :  { %211 = vmatpush3.bf16.xpose.msra.mxu0 %v233_v5 }
  0x49   :  { %212 = vmatprep.subr.bf16.mxu0 %v313_v0 }
  0x50   :  { %213 = vmatpush3.bf16.xpose.msra.mxu0 %v234_v6 }
  0x51   :  { %214 = vmatprep.subr.bf16.mxu0 %v313_v0 }
  0x58   :  { %215 = vmatpush3.bf16.xpose.msra.mxu0 %v235_v7 }
  0x59   :  { %216 = vmatprep.subr.bf16.mxu0 %v313_v0 }
  0x60   :  { %217 = vmatpush3.bf16.xpose.msra.mxu0 %v236_v8 }
  0x67   :  { %219 = vmatmul.mubr.bf16.vlgmr.msra.gmra.mrb[0].mxu0 %v48_v9 }
 0x13a   :  { %v147_v11 = vpop.f32.mrb[0].mxu0 }
 0x13b   :  { %v166_v12 = vmul.f32 %v192_v10, %v147_v11  ;;  %v220_v13 = vpop.f32.mrb[1].mxu0 }
 0x13c   :  { %v150_v14 = vpop.f32.mrb[2].mxu0 }
 0x13d   :  { %167 = vst [vmem:[#allocation8] sm:$0xff] %v166_v12  ;;  %v221_v15 = vpop.f32.mrb[3].mxu0 }
 0x13e   :  { %292 = shalt.err (!%p289_p6)
}
 0x13f   :  { %s293_s2 = scalar_lea.hbm %s385_s3, 128 }
 0x140   :  { %p294_p7 = scmp.ne.s32.totalorder %s385_s3, %s293_s2  ;;  %p297_p8 = scmp.lt.u32.totalorder %s293_s2, %s385_s3 }
 0x142   :  { %p299_p9 = pnand %p297_p8, %p294_p7 }
 0x144   :  { %302 = shalt.err (!%p299_p9)
}
 0x145   :  { %177 = dma.vmem_to_hbm [thread:$0]  %s175_s12, 128, %s385_s3, [#allocation5]  }
 0x146   :  { %307 = dma.done.wait [#allocation5], 128  }
 0x147   :  { %308 = vsyncadd [#allocation5], 4294967168 }
 0x148   :  { %181 = vsyncpa [#allocation4], 1 }
 0x149   :  { %182 = vsyncpa [#allocation7], 1 }
 0x14a   :  { %183 = vsyncpa [#allocation5], 1 }

</bundles_post_ra>
